<compile_context>
chip_gen: v7x
topology: tpu7x:2x2x1
jax: 0.10.0
libtpu: 0.0.40
codegen_flags: <defaults>
</compile_context>

<pallas_src>
import functools

import jax
import jax.numpy as jnp
from jax.experimental import pallas as pl
from jax.experimental.pallas import tpu as pltpu

LANE = 128                   # vreg lane width
SUB = 8                      # vreg sublane count
TILE_ROWS = 8192             # (8192, 128) f32 block = 4 MiB per input
VMEM_LIMIT_BYTES = 48 << 20  # safe on v7x (64 MiB phys) and v5e/v6e (128 MiB)


def _detect_num_tensorcores():
    """Best-effort TensorCore count (2 on v7x, 1 on v5e/v6e)."""
    try:
        info = pltpu.get_tpu_info()
        for name in ("num_cores", "core_count", "num_tensorcores",
                     "tensorcore_count", "num_cores_per_chip"):
            v = getattr(info, name, None)
            if isinstance(v, int) and v >= 1:
                return v
    except Exception:
        pass
    try:
        kind = jax.devices()[0].device_kind.lower()
        if "v7" in kind or "7x" in kind:
            return 2
    except Exception:
        pass
    return 1


# ---------------------------------------------------------------------------
# Reduce path ('mean' / 'sum')
# ---------------------------------------------------------------------------
def _charbonnier_reduce_kernel(p_ref, t_ref, out_ref, *, eps, rows,
                               block_rows, blocks_per_core, n_full_blocks):
    """Accumulate an (8, 128) partial sum of sqrt((p-t)^2 + eps) per core."""
    c = pl.program_id(0)   # core-split axis ("parallel")
    i = pl.program_id(1)   # row-block axis ("arbitrary" reduction)

    @pl.when(i == 0)
    def _init():
        out_ref[...] = jnp.zeros_like(out_ref)

    g = c * blocks_per_core + i            # logical global block id

    # Interior (fully valid) blocks: fused streaming compute+accumulate, no
    # masking, no pre-branch temp.
    @pl.when(g < n_full_blocks)
    def _full():
        diff = p_ref[...].astype(jnp.float32) - t_ref[...].astype(jnp.float32)
        val = jnp.sqrt(diff * diff + eps)
        out_ref[...] += jnp.sum(val.reshape(-1, SUB, LANE), axis=0)

    # Ragged tail block and/or redundant clamped blocks from the core split:
    # mask by row index against the remaining valid-row count (no global flat
    # element index -> no int32 overflow for huge tensors).
    @pl.when(g >= n_full_blocks)
    def _tail():
        diff = p_ref[...].astype(jnp.float32) - t_ref[...].astype(jnp.float32)
        val = jnp.sqrt(diff * diff + eps)
        row = jax.lax.broadcasted_iota(jnp.int32, val.shape, 0)
        valid_rows = rows - g * block_rows  # <= 0 for clamped redundant blocks
        val = jnp.where(row < valid_rows, val, 0.0)
        out_ref[...] += jnp.sum(val.reshape(-1, SUB, LANE), axis=0)


# ---------------------------------------------------------------------------
# Elementwise path ('none')
# ---------------------------------------------------------------------------
def _charbonnier_ew_kernel(p_ref, t_ref, o_ref, *, eps, loss_weight):
    diff = p_ref[...].astype(jnp.float32) - t_ref[...].astype(jnp.float32)
    o_ref[...] = (loss_weight * jnp.sqrt(diff * diff + eps)).astype(o_ref.dtype)


# ---------------------------------------------------------------------------
# Wrapper
# ---------------------------------------------------------------------------
def charbonnier_loss_pallas(pred, target, *, loss_weight=1.0, reduction="mean",
                            eps=1e-12):
    """Pallas implementation of CharbonnierLoss.forward (weight=None path)."""
    assert reduction in ("none", "mean", "sum")
    assert pred.shape == target.shape

    orig_shape = pred.shape
    n_valid = pred.size
    flat_p = pred.reshape(-1)
    flat_t = target.reshape(-1)

    # Lane-aligned prefix handled by the kernel; tiny remainder in plain jnp.
    n_lane = (n_valid // LANE) * LANE
    rem = n_valid - n_lane            # < 128 elements
    rows = n_lane // LANE

    # Tiny-input fallback (< ~1 KiB): pure jnp, not worth a kernel launch.
    if rows < SUB:
        val = jnp.sqrt(
            (flat_p.astype(jnp.float32) - flat_t.astype(jnp.float32)) ** 2 + eps)
        if reduction == "none":
            return (loss_weight * val).astype(pred.dtype).reshape(orig_shape)
        total = jnp.sum(val)
        if reduction == "mean":
            total = total / jnp.float32(n_valid)
        return loss_weight * total

    # Free bitcast-reshape when n % 128 == 0 (typical NCHW); otherwise a
    # prefix slice of the lane-aligned part (rare; still avoids jnp.pad's
    # full-array rewrite of *both* tensors to a larger padded size).
    p_pref = flat_p if rem == 0 else flat_p[:n_lane]
    t_pref = flat_t if rem == 0 else flat_t[:n_lane]
    p2 = p_pref.reshape(rows, LANE)
    t2 = t_pref.reshape(rows, LANE)

    # Static block shape: always a multiple of 8 rows (ragged array tail is
    # masked in-kernel / partially written by Pallas).
    block_rows = min(TILE_ROWS, (rows // SUB) * SUB)
    itemsize = jnp.dtype(pred.dtype).itemsize

    if reduction == "none":
        grid = (pl.cdiv(rows, block_rows),)
        cost = pl.CostEstimate(flops=4 * n_lane, transcendentals=n_lane,
                               bytes_accessed=3 * n_lane * itemsize)
        out2 = pl.pallas_call(
            functools.partial(_charbonnier_ew_kernel, eps=eps,
                              loss_weight=loss_weight),
            out_shape=jax.ShapeDtypeStruct((rows, LANE), pred.dtype),
            grid=grid,
            in_specs=[pl.BlockSpec((block_rows, LANE), lambda i: (i, 0)),
                      pl.BlockSpec((block_rows, LANE), lambda i: (i, 0))],
            out_specs=pl.BlockSpec((block_rows, LANE), lambda i: (i, 0)),
            compiler_params=pltpu.CompilerParams(
                dimension_semantics=("parallel",),
                vmem_limit_bytes=VMEM_LIMIT_BYTES),
            cost_estimate=cost,
        )(p2, t2)
        out_flat = out2.reshape(-1)
        if rem:
            rp = flat_p[n_lane:].astype(jnp.float32)
            rt = flat_t[n_lane:].astype(jnp.float32)
            rem_val = (loss_weight * jnp.sqrt((rp - rt) ** 2 + eps)).astype(
                pred.dtype)
            out_flat = jnp.concatenate([out_flat, rem_val])
        return out_flat.reshape(orig_shape)

    # ---- 'mean' / 'sum' ----
    total_blocks = pl.cdiv(rows, block_rows)
    n_full_blocks = rows // block_rows      # blocks that are 100% valid
    num_cores = max(1, min(_detect_num_tensorcores(), 8, total_blocks))
    blocks_per_core = pl.cdiv(total_blocks, num_cores)

    def in_index_map(c, i):
        # Clamp so the DMA never walks off the array; redundant (clamped)
        # blocks contribute exactly zero via the in-kernel row mask.
        return (jnp.minimum(c * blocks_per_core + i, total_blocks - 1), 0)

    cost = pl.CostEstimate(
        flops=4 * n_lane, transcendentals=n_lane,
        bytes_accessed=2 * n_lane * itemsize + num_cores * SUB * LANE * 4)

    partials = pl.pallas_call(
        functools.partial(_charbonnier_reduce_kernel, eps=eps, rows=rows,
                          block_rows=block_rows,
                          blocks_per_core=blocks_per_core,
                          n_full_blocks=n_full_blocks),
        out_shape=jax.ShapeDtypeStruct((num_cores, SUB, LANE), jnp.float32),
        grid=(num_cores, blocks_per_core),
        in_specs=[pl.BlockSpec((block_rows, LANE), in_index_map),
                  pl.BlockSpec((block_rows, LANE), in_index_map)],
        out_specs=pl.BlockSpec((None, SUB, LANE), lambda c, i: (c, 0, 0)),
        compiler_params=pltpu.CompilerParams(
            dimension_semantics=("parallel", "arbitrary"),
            vmem_limit_bytes=VMEM_LIMIT_BYTES),
        cost_estimate=cost,
    )(p2, t2)

    total = jnp.sum(partials)
    if rem:
        rp = flat_p[n_lane:].astype(jnp.float32)
        rt = flat_t[n_lane:].astype(jnp.float32)
        total = total + jnp.sum(jnp.sqrt((rp - rt) ** 2 + eps))
    if reduction == "mean":
        # f32 divisor: inexact beyond 2^24 elements (matches f32 torch drift).
        total = total / jnp.float32(n_valid)
    return loss_weight * total


def charbonnier_loss_ref(pred, target, *, loss_weight=1.0, reduction="mean",
                         eps=1e-12):
    val = jnp.sqrt((pred - target) ** 2 + eps)
    if reduction == "mean":
        val = jnp.mean(val)
    elif reduction == "sum":
        val = jnp.sum(val)
    return loss_weight * val


if __name__ == "__main__":
    key = jax.random.PRNGKey(0)
    k1, k2, k3, k4 = jax.random.split(key, 4)
    # (N, C, H, W) as the module expects.
    pred = jax.random.normal(k1, (2, 4, 16, 16), dtype=jnp.float32)
    target = jax.random.normal(k2, (2, 4, 16, 16), dtype=jnp.float32)

    # Default module config: loss_weight=1.0, reduction='mean', eps=1e-12.
    out = jax.block_until_ready(
        charbonnier_loss_pallas(pred, target, loss_weight=1.0,
                                reduction="mean", eps=1e-12))
    ref = charbonnier_loss_ref(pred, target, loss_weight=1.0,
                               reduction="mean", eps=1e-12)
    assert jnp.allclose(out, ref, rtol=1e-5, atol=1e-6), (out, ref)

    # 'sum' path.
    out_sum = jax.block_until_ready(
        charbonnier_loss_pallas(pred, target, reduction="sum"))
    ref_sum = charbonnier_loss_ref(pred, target, reduction="sum")
    assert jnp.allclose(out_sum, ref_sum, rtol=1e-5, atol=1e-4), (out_sum, ref_sum)

    # 'none' path.
    out_none = jax.block_until_ready(
        charbonnier_loss_pallas(pred, target, reduction="none"))
    ref_none = charbonnier_loss_ref(pred, target, reduction="none")
    assert jnp.allclose(out_none, ref_none, rtol=1e-5, atol=1e-6)

    # Misaligned size (n % 1024 != 0, n % 128 != 0): exercises ragged-row
    # masking + plain-jnp remainder handling.
    pred_m = jax.random.normal(k3, (3, 4, 16, 17), dtype=jnp.float32)
    target_m = jax.random.normal(k4, (3, 4, 16, 17), dtype=jnp.float32)
    out_m = jax.block_until_ready(
        charbonnier_loss_pallas(pred_m, target_m, loss_weight=0.5,
                                reduction="mean"))
    ref_m = charbonnier_loss_ref(pred_m, target_m, loss_weight=0.5,
                                 reduction="mean")
    assert jnp.allclose(out_m, ref_m, rtol=1e-5, atol=1e-6), (out_m, ref_m)

    print("KERNEL_OK")
</pallas_src>

<mosaic_0001>
module attributes {stable_mosaic.version = 11 : i64} {
  func.func @_charbonnier_reduce_kernel(%arg0: i32, %arg1: i32, %arg2: memref<16x128xf32, #tpu.memory_space<vmem>>, %arg3: memref<16x128xf32, #tpu.memory_space<vmem>>, %arg4: memref<1x8x128xf32, #tpu.memory_space<vmem>>) attributes {dimension_semantics = [#tpu.dimension_semantics<parallel>, #tpu.dimension_semantics<arbitrary>], iteration_bounds = array<i64: 1, 1>, scalar_prefetch = 0 : i64, scratch_operands = 0 : i64, tpu.core_type = #tpu.core_type<tc>, window_params = [{transform_indices = @transform_0, window_bounds = array<i64: 16, 128>}, {transform_indices = @transform_1, window_bounds = array<i64: 16, 128>}, {transform_indices = @transform_2, window_bounds = array<i64: 1, 8, 128>}]} {
    %c0_i32 = arith.constant 0 : i32
    %0 = arith.cmpi eq, %arg1, %c0_i32 : i32
    %1 = arith.extui %0 : i1 to i32
    %c0_i32_0 = arith.constant 0 : i32
    %2 = arith.cmpi ne, %1, %c0_i32_0 : i32
    scf.if %2 {
      %cst = arith.constant 0.000000e+00 : f32
      %11 = vector.broadcast %cst : f32 to vector<8x128xf32>
      %c0 = arith.constant 0 : index
      %c0_5 = arith.constant 0 : index
      %c0_6 = arith.constant 0 : index
      %12 = vector.load %arg4[%c0, %c0_5, %c0_6] : memref<1x8x128xf32, #tpu.memory_space<vmem>>, vector<1x8x128xf32>
      %13 = vector.shape_cast %12 : vector<1x8x128xf32> to vector<8x128xf32>
      %14 = vector.shape_cast %11 : vector<8x128xf32> to vector<1x8x128xf32>
      tpu.vector_store %arg4[%c0, %c0_5, %c0_6], %14 {strides = array<i32>} : memref<1x8x128xf32, #tpu.memory_space<vmem>>, vector<1x8x128xf32>,
    } else {
    }
    %c1_i32 = arith.constant 1 : i32
    %3 = arith.muli %arg0, %c1_i32 : i32
    %4 = arith.addi %3, %arg1 : i32
    %c1_i32_1 = arith.constant 1 : i32
    %5 = arith.cmpi slt, %4, %c1_i32_1 : i32
    %6 = arith.extui %5 : i1 to i32
    %c0_i32_2 = arith.constant 0 : i32
    %7 = arith.cmpi ne, %6, %c0_i32_2 : i32
    scf.if %7 {
      %c0 = arith.constant 0 : index
      %c0_5 = arith.constant 0 : index
      %11 = vector.load %arg2[%c0, %c0_5] : memref<16x128xf32, #tpu.memory_space<vmem>>, vector<16x128xf32>
      %c0_6 = arith.constant 0 : index
      %c0_7 = arith.constant 0 : index
      %12 = vector.load %arg3[%c0_6, %c0_7] : memref<16x128xf32, #tpu.memory_space<vmem>>, vector<16x128xf32>
      %13 = arith.subf %11, %12 : vector<16x128xf32>
      %14 = arith.mulf %13, %13 : vector<16x128xf32>
      %cst = arith.constant 9.99999996E-13 : f32
      %15 = vector.broadcast %cst : f32 to vector<16x128xf32>
      %16 = arith.addf %14, %15 : vector<16x128xf32>
      %17 = math.sqrt %16 : vector<16x128xf32>
      %c0_8 = arith.constant 0 : index
      %c0_9 = arith.constant 0 : index
      %c0_10 = arith.constant 0 : index
      %18 = vector.load %arg4[%c0_8, %c0_9, %c0_10] : memref<1x8x128xf32, #tpu.memory_space<vmem>>, vector<1x8x128xf32>
      %19 = vector.shape_cast %18 : vector<1x8x128xf32> to vector<8x128xf32>
      %20 = vector.shape_cast %17 : vector<16x128xf32> to vector<2x8x128xf32>
      %cst_11 = arith.constant dense<0.000000e+00> : vector<8x128xf32>
      %21 = vector.multi_reduction <add>, %20, %cst_11 [0] : vector<2x8x128xf32> to vector<8x128xf32>
      %22 = arith.addf %19, %21 : vector<8x128xf32>
      %c0_12 = arith.constant 0 : index
      %c0_13 = arith.constant 0 : index
      %c0_14 = arith.constant 0 : index
      %23 = vector.load %arg4[%c0_12, %c0_13, %c0_14] : memref<1x8x128xf32, #tpu.memory_space<vmem>>, vector<1x8x128xf32>
      %24 = vector.shape_cast %23 : vector<1x8x128xf32> to vector<8x128xf32>
      %25 = vector.shape_cast %22 : vector<8x128xf32> to vector<1x8x128xf32>
      tpu.vector_store %arg4[%c0_12, %c0_13, %c0_14], %25 {strides = array<i32>} : memref<1x8x128xf32, #tpu.memory_space<vmem>>, vector<1x8x128xf32>,
    } else {
    }
    %c1_i32_3 = arith.constant 1 : i32
    %8 = arith.cmpi sge, %4, %c1_i32_3 : i32
    %9 = arith.extui %8 : i1 to i32
    %c0_i32_4 = arith.constant 0 : i32
    %10 = arith.cmpi ne, %9, %c0_i32_4 : i32
    scf.if %10 {
      %c0 = arith.constant 0 : index
      %c0_5 = arith.constant 0 : index
      %11 = vector.load %arg2[%c0, %c0_5] : memref<16x128xf32, #tpu.memory_space<vmem>>, vector<16x128xf32>
      %c0_6 = arith.constant 0 : index
      %c0_7 = arith.constant 0 : index
      %12 = vector.load %arg3[%c0_6, %c0_7] : memref<16x128xf32, #tpu.memory_space<vmem>>, vector<16x128xf32>
      %13 = arith.subf %11, %12 : vector<16x128xf32>
      %14 = arith.mulf %13, %13 : vector<16x128xf32>
      %cst = arith.constant 9.99999996E-13 : f32
      %15 = vector.broadcast %cst : f32 to vector<16x128xf32>
      %16 = arith.addf %14, %15 : vector<16x128xf32>
      %17 = math.sqrt %16 : vector<16x128xf32>
      %18 = tpu.iota {dimensions = array<i32: 0>} : vector<16x128xi32>
      %c16_i32 = arith.constant 16 : i32
      %19 = arith.muli %4, %c16_i32 : i32
      %c16_i32_8 = arith.constant 16 : i32
      %20 = arith.subi %c16_i32_8, %19 : i32
      %21 = vector.broadcast %20 : i32 to vector<16x128xi32>
      %22 = arith.cmpi slt, %18, %21 : vector<16x128xi32>
      %cst_9 = arith.constant 0.000000e+00 : f32
      %23 = vector.broadcast %cst_9 : f32 to vector<16x128xf32>
      %24 = arith.select %22, %17, %23 : vector<16x128xi1>, vector<16x128xf32>
      %c0_10 = arith.constant 0 : index
      %c0_11 = arith.constant 0 : index
      %c0_12 = arith.constant 0 : index
      %25 = vector.load %arg4[%c0_10, %c0_11, %c0_12] : memref<1x8x128xf32, #tpu.memory_space<vmem>>, vector<1x8x128xf32>
      %26 = vector.shape_cast %25 : vector<1x8x128xf32> to vector<8x128xf32>
      %27 = vector.shape_cast %24 : vector<16x128xf32> to vector<2x8x128xf32>
      %cst_13 = arith.constant dense<0.000000e+00> : vector<8x128xf32>
      %28 = vector.multi_reduction <add>, %27, %cst_13 [0] : vector<2x8x128xf32> to vector<8x128xf32>
      %29 = arith.addf %26, %28 : vector<8x128xf32>
      %c0_14 = arith.constant 0 : index
      %c0_15 = arith.constant 0 : index
      %c0_16 = arith.constant 0 : index
      %30 = vector.load %arg4[%c0_14, %c0_15, %c0_16] : memref<1x8x128xf32, #tpu.memory_space<vmem>>, vector<1x8x128xf32>
      %31 = vector.shape_cast %30 : vector<1x8x128xf32> to vector<8x128xf32>
      %32 = vector.shape_cast %29 : vector<8x128xf32> to vector<1x8x128xf32>
      tpu.vector_store %arg4[%c0_14, %c0_15, %c0_16], %32 {strides = array<i32>} : memref<1x8x128xf32, #tpu.memory_space<vmem>>, vector<1x8x128xf32>,
    } else {
    }
    return
  }
  func.func @transform_0(%arg0: i32, %arg1: i32) -> (i32, i32) {
    %c1_i32 = arith.constant 1 : i32
    %0 = arith.muli %arg0, %c1_i32 : i32
    %1 = arith.addi %0, %arg1 : i32
    %c0_i32 = arith.constant 0 : i32
    %2 = arith.minsi %1, %c0_i32 : i32
    %c0_i32_0 = arith.constant 0 : i32
    %c0_i32_1 = arith.constant 0 : i32
    return %2, %c0_i32_0 : i32, i32
  }
  func.func @transform_1(%arg0: i32, %arg1: i32) -> (i32, i32) {
    %c1_i32 = arith.constant 1 : i32
    %0 = arith.muli %arg0, %c1_i32 : i32
    %1 = arith.addi %0, %arg1 : i32
    %c0_i32 = arith.constant 0 : i32
    %2 = arith.minsi %1, %c0_i32 : i32
    %c0_i32_0 = arith.constant 0 : i32
    %c0_i32_1 = arith.constant 0 : i32
    return %2, %c0_i32_0 : i32, i32
  }
  func.func @transform_2(%arg0: i32, %arg1: i32) -> (i32, i32, i32) {
    %c0_i32 = arith.constant 0 : i32
    %c0_i32_0 = arith.constant 0 : i32
    %c0_i32_1 = arith.constant 0 : i32
    return %arg0, %c0_i32, %c0_i32_0 : i32, i32, i32
  }
}

</mosaic_0001>

<bundles_post_ra>
// kernel: tpu_custom_call.1
= control target key start
LH: loop header
LB: loop body
LE: loop exit
PB: predicated region body
PF: predicated region fallthrough
CT: control target
= control target key end

     0   :  { %7 = vsyncpa [#allocation3], 0  ;;  %s298_s0 = inlined_call_operand.hbm [shape: f32[16,128], index: 0, kind: input, shape index: {}]   ;;  %s299_s1 = inlined_call_operand.hbm [shape: f32[16,128], index: 1, kind: input, shape index: {}]   ;;  %s300_s2 = inlined_call_operand.hbm [shape: f32[1,8,128], index: 2, kind: output, shape index: {}]  }
   0x1   :  { %8 = vsyncpa [#allocation6], 0 }
   0x2   :  { %9 = vsyncpa [#allocation4], 0  ;;  %s242_s9 = smov [#allocation2]   ;;  %s170_s13 = scalar_lea.hbm %s298_s0, 256 }
   0x3   :  { %s21_s10 = sshll.u32 %s242_s9, 4  ;;  %p171_p0 = scmp.ne.s32.totalorder %s298_s0, %s170_s13  ;;  %s22_s10 = int_to_ptr.vmem [resolvable:$true] %s21_s10 }
   0x4   :  { %p174_p1 = scmp.lt.u32.totalorder %s170_s13, %s298_s0 }
   0x6   :  { %p176_p2 = pnand %p174_p1, %p171_p0 }
   0x8   :  { %179 = shalt.err (!%p176_p2)
}
   0x9   :  { %s180_s18 = scalar_lea.vmem %s22_s10, 256  ;;  %p185_p4 = scmp.lt.s32.totalorder %s22_s10, %s22_s10 }
   0xa   :  { %p181_p3 = scmp.ne.s32.totalorder %s22_s10, %s180_s18  ;;  %p186_p5 = scmp.lt.s32.totalorder %s180_s18, %s180_s18 }
   0xc   :  { %p187_p6 = por %p186_p5, %p185_p4 }
   0xe   :  { %p188_p7 = pnand %p187_p6, %p181_p3 }
  0x10   :  { %191 = shalt.err (!%p188_p7)
}
  0x11   :  { %s243_s19 = smov 128   ;;  %s244_s20 = smov 8  }
  0x12   :  { %27 = dma.hbm_to_vmem [thread:$0]  %s298_s0, 256, %s22_s10, [#allocation3], %s243_s19, %s243_s19, %s244_s20  }
  0x13   :  { %s245_s23 = smov [#allocation5]   ;;  %s192_s27 = scalar_lea.hbm %s299_s1, 256 }
  0x14   :  { %s39_s24 = sshll.u32 %s245_s23, 4  ;;  %p193_p8 = scmp.ne.s32.totalorder %s299_s1, %s192_s27  ;;  %s40_s24 = int_to_ptr.vmem [resolvable:$true] %s39_s24 }
  0x15   :  { %p196_p9 = scmp.lt.u32.totalorder %s192_s27, %s299_s1 }
  0x17   :  { %p198_p10 = pnand %p196_p9, %p193_p8 }
  0x19   :  { %201 = shalt.err (!%p198_p10)
}
  0x1a   :  { %s202_s4 = scalar_lea.vmem %s40_s24, 256  ;;  %p207_p12 = scmp.lt.s32.totalorder %s40_s24, %s40_s24 }
  0x1b   :  { %p203_p11 = scmp.ne.s32.totalorder %s40_s24, %s202_s4  ;;  %p208_p13 = scmp.lt.s32.totalorder %s202_s4, %s202_s4 }
  0x1d   :  { %p209_p0 = por %p208_p13, %p207_p12 }
  0x1f   :  { %p210_p1 = pnand %p209_p0, %p203_p11 }
  0x21   :  { %213 = shalt.err (!%p210_p1)
}
  0x22   :  { %45 = dma.hbm_to_vmem [thread:$0]  %s299_s1, 256, %s40_s24, [#allocation6], %s243_s19, %s243_s19, %s244_s20  }
  0x23   :  { %236 = dma.done.wait [#allocation3], 256  }
  0x24   :  { %237 = vsyncadd [#allocation3], 4294967040 }
  0x25   :  { %238 = dma.done.wait [#allocation6], 256  }
  0x26   :  { %239 = vsyncadd [#allocation6], 4294967040  ;;  %v70_v0 = vld [vmem:[#allocation2] sm:$0xff]  ;;  %v71_v1 = vld [vmem:[#allocation2 + $0x8] sm:$0xff]  ;;  %s246_s1 = smov [#allocation7]  }
  0x27   :  { %v72_v2 = vld [vmem:[#allocation5] sm:$0xff]  ;;  %v73_v3 = vld [vmem:[#allocation5 + $0x8] sm:$0xff]  ;;  %s146_s6 = sshll.u32 %s246_s1, 4  ;;  %s147_s6 = int_to_ptr.vmem [resolvable:$true] %s146_s6 }
  0x28   :  { %v74_v4 = vsub.f32 %v70_v0, %v72_v2  ;;  %v75_v5 = vsub.f32 %v71_v1, %v73_v3  ;;  %s214_s7 = scalar_lea.vmem %s147_s6, 128  ;;  %p219_p3 = scmp.lt.s32.totalorder %s147_s6, %s147_s6 }
  0x29   :  { %p215_p2 = scmp.ne.s32.totalorder %s147_s6, %s214_s7  ;;  %p220_p4 = scmp.lt.s32.totalorder %s214_s7, %s214_s7 }
  0x2a   :  { %v76_v6 = vmul.f32 %v74_v4, %v74_v4  ;;  %v77_v7 = vmul.f32 %v75_v5, %v75_v5 }
  0x2b   :  { %p221_p5 = por %p220_p4, %p219_p3 }
  0x2c   :  { %v78_v8 = vadd.f32 1e-12, %v76_v6  ;;  %v79_v9 = vadd.f32 1e-12, %v77_v7 }
  0x2d   :  { %p222_p6 = pnand %p221_p5, %p215_p2 }
  0x2e   :  { %166 = vrsqrt.f32 %v78_v8  ;;  %vm82_vm0 = vcmp.eq.f32.partialorder %v78_v8, inf  ;;  %v85_v11 = vand.u32 2147483648, %v78_v8  ;;  %vm84_vm1 = vcmp.eq.f32.partialorder %v78_v8, 0.0 }
  0x2f   :  { %168 = vrsqrt.f32 %v79_v9  ;;  %vm89_vm2 = vcmp.eq.f32.partialorder %v79_v9, inf  ;;  %v92_v14 = vand.u32 2147483648, %v79_v9  ;;  %vm91_vm3 = vcmp.eq.f32.partialorder %v79_v9, 0.0 }
  0x38   :  { %v167_v10 = vpop.eup %166 }
  0x39   :  { %v169_v12 = vpop.eup %168  ;;  %v81_v13 = vmul.f32 %v167_v10, %v78_v8 }
  0x3a   :  { %v88_v15 = vmul.f32 %v169_v12, %v79_v9 }
  0x3b   :  { %v83_v16 = vsel %vm82_vm0, %v78_v8, %v81_v13 }
  0x3c   :  { %v86_v17 = vsel %vm84_vm1, %v85_v11, %v83_v16  ;;  %v90_v18 = vsel %vm89_vm2, %v79_v9, %v88_v15 }
  0x3d   :  { %v93_v19 = vsel %vm91_vm3, %v92_v14, %v90_v18 }
  0x3e   :  { %v95_v20 = vadd.f32 %v93_v19, %v86_v17 }
  0x40   :  { %97 = vst [vmem:[#allocation7] sm:$0xff] %v95_v20 }
  0x41   :  { %225 = shalt.err (!%p222_p6)
}
  0x42   :  { %s226_s10 = scalar_lea.hbm %s300_s2, 128 }
  0x43   :  { %p227_p7 = scmp.ne.s32.totalorder %s300_s2, %s226_s10  ;;  %p230_p8 = scmp.lt.u32.totalorder %s226_s10, %s300_s2 }
  0x45   :  { %p232_p9 = pnand %p230_p8, %p227_p7 }
  0x47   :  { %235 = shalt.err (!%p232_p9)
}
  0x48   :  { %149 = dma.vmem_to_hbm [thread:$0]  %s147_s6, 128, %s300_s2, [#allocation4]  }
  0x49   :  { %240 = dma.done.wait [#allocation4], 128  }
  0x4a   :  { %241 = vsyncadd [#allocation4], 4294967168 }
  0x4b   :  { %153 = vsyncpa [#allocation3], 1 }
  0x4c   :  { %154 = vsyncpa [#allocation6], 1 }
  0x4d   :  { %155 = vsyncpa [#allocation4], 1 }

</bundles_post_ra>
